<compile_context>
chip_gen: v7x
topology: tpu7x:2x2x1
jax: 0.10.0
libtpu: 0.0.40
codegen_flags: <defaults>
</compile_context>

<pallas_src>
import functools

import jax
import jax.numpy as jnp
from jax.experimental import pallas as pl
from jax.experimental.pallas import tpu as pltpu


# ----------------------------------------------------------------------------
# Pallas kernels
# ----------------------------------------------------------------------------
def _linear_relu_kernel(x_ref, w_ref, b_ref, o_ref):
    """y = relu(x @ w + b) on one M-tile; weights/bias stay VMEM-resident."""
    y = jnp.dot(x_ref[...], w_ref[...], preferred_element_type=jnp.float32)
    y = jnp.maximum(y + b_ref[...], 0.0)
    o_ref[...] = y.astype(o_ref.dtype)


def _tail_kernel(feat_ref, w3_ref, b3_ref, cw3_ref, comp_ref, w4_ref, b4_ref,
                 onehot_ref, out_ref, *, action_dim):
    """Fused MLP tail for both heads.

    fc1 (block-diag actor|critic, K=1024) + compass rank-1 term + ReLU,
    fc2 into a 128-lane slab (lanes [0,A) = actor logits, lane A = value),
    log-softmax, Categorical log_prob / entropy, value extraction.
    Output: (B, 128) slab with col0=logp, col1=entropy, col2=value.
    """
    # fc1 on the MXU; compass term is a rank-1 VPU broadcast-add (keeps K clean).
    h = jnp.dot(feat_ref[...], w3_ref[...], preferred_element_type=jnp.float32)
    h = h + b3_ref[...] + comp_ref[...] * cw3_ref[...]
    h = jnp.maximum(h, 0.0).astype(w4_ref.dtype)

    # fc2: lane-dense (128 cols) padded logits/value slab.
    z = jnp.dot(h, w4_ref[...], preferred_element_type=jnp.float32) + b4_ref[...]

    col = jax.lax.broadcasted_iota(jnp.int32, z.shape, 1)
    is_act = col < action_dim

    # log-softmax over the actor lanes only (finite mask value, no -inf).
    zl = jnp.where(is_act, z, jnp.float32(-1e30))
    m = jnp.max(zl, axis=-1, keepdims=True)
    e = jnp.where(is_act, jnp.exp(zl - m), 0.0)
    denom = jnp.sum(e, axis=-1, keepdims=True)
    logsm = zl - m - jnp.log(denom)
    probs = e * pl.reciprocal(denom, approx=True)      # EUP slot, ~free

    logp = jnp.sum(onehot_ref[...] * jnp.where(is_act, logsm, 0.0),
                   axis=-1, keepdims=True)
    ent = -jnp.sum(jnp.where(is_act, probs * logsm, 0.0),
                   axis=-1, keepdims=True)
    value = jnp.sum(jnp.where(col == action_dim, z, 0.0),
                    axis=-1, keepdims=True)

    out_ref[...] = (jnp.where(col == 0, logp, 0.0)
                    + jnp.where(col == 1, ent, 0.0)
                    + jnp.where(col == 2, value, 0.0))


# ----------------------------------------------------------------------------
# Pallas wrappers
# ----------------------------------------------------------------------------
def pallas_linear_relu(x, w, b):
    """relu(x @ w + b); x:(M,K) bf16, w:(K,N) bf16, b:(1,N) f32 -> (M,N) bf16."""
    M, K = x.shape
    N = w.shape[1]
    TM = M if M <= 512 else 512          # row-independent -> partial tiles OK
    return pl.pallas_call(
        _linear_relu_kernel,
        out_shape=jax.ShapeDtypeStruct((M, N), jnp.bfloat16),
        grid=(pl.cdiv(M, TM),),
        in_specs=[
            pl.BlockSpec((TM, K), lambda i: (i, 0)),
            pl.BlockSpec((K, N), lambda i: (0, 0)),   # weights stay resident
            pl.BlockSpec((1, N), lambda i: (0, 0)),
        ],
        out_specs=pl.BlockSpec((TM, N), lambda i: (i, 0)),
        compiler_params=pltpu.CompilerParams(
            dimension_semantics=("parallel",)),
    )(x, w, b)


def pallas_actor_critic_tail(feat, w3, b3, cw3, comp, w4, b4, onehot, action_dim):
    B, K = feat.shape
    H2 = w3.shape[1]
    NL = w4.shape[1]                     # 128-lane slab
    TB = B if B <= 256 else 256
    kernel = functools.partial(_tail_kernel, action_dim=action_dim)
    return pl.pallas_call(
        kernel,
        out_shape=jax.ShapeDtypeStruct((B, NL), jnp.float32),
        grid=(pl.cdiv(B, TB),),
        in_specs=[
            pl.BlockSpec((TB, K), lambda i: (i, 0)),
            pl.BlockSpec((K, H2), lambda i: (0, 0)),
            pl.BlockSpec((1, H2), lambda i: (0, 0)),
            pl.BlockSpec((1, H2), lambda i: (0, 0)),
            pl.BlockSpec((TB, 1), lambda i: (i, 0)),
            pl.BlockSpec((H2, NL), lambda i: (0, 0)),
            pl.BlockSpec((1, NL), lambda i: (0, 0)),
            pl.BlockSpec((TB, NL), lambda i: (i, 0)),
        ],
        out_specs=pl.BlockSpec((TB, NL), lambda i: (i, 0)),
        compiler_params=pltpu.CompilerParams(
            dimension_semantics=("parallel",)),
    )(feat, w3, b3, cw3, comp, w4, b4, onehot)


# ----------------------------------------------------------------------------
# Conv lowering glue (reshape-only; all compute stays in Pallas)
# ----------------------------------------------------------------------------
def _patchify(x_nhwc, k):
    """Non-overlapping kxk patches -> im2col rows with (kh, kw, C) column order."""
    B, H, W, C = x_nhwc.shape
    x = x_nhwc.reshape(B, H // k, k, W // k, k, C)
    x = jnp.transpose(x, (0, 1, 3, 2, 4, 5))           # (B, H/k, W/k, kh, kw, C)
    return x.reshape(B * (H // k) * (W // k), k * k * C)


def _conv_w_to_mat(w_oihw):
    """(O, I, kh, kw) conv weight -> (kh*kw*I, O), matching _patchify columns."""
    return jnp.transpose(w_oihw, (2, 3, 1, 0)).reshape(-1, w_oihw.shape[0])


# ----------------------------------------------------------------------------
# Parameters: per-head synthetic init + one-time packing into merged tensors
# ----------------------------------------------------------------------------
def init_head_params(key, out_dim, hidden=64):
    """One ConvNet head's parameters (conv in torch OIHW; fc in (K, N) layout).

    fc1 rows 0..511 are indexed in torch NCHW-flatten order (c*16 + h*4 + w);
    row 512 is the compass-angle column.
    """
    ks = jax.random.split(key, 4)
    s = 0.05
    return {
        "conv1_w": jax.random.normal(ks[0], (16, 3, 4, 4), jnp.float32) * s,
        "conv1_b": jnp.zeros((16,), jnp.float32),
        "conv2_w": jax.random.normal(ks[1], (32, 16, 4, 4), jnp.float32) * s,
        "conv2_b": jnp.zeros((32,), jnp.float32),
        "fc1_w": jax.random.normal(ks[2], (513, hidden), jnp.float32) * s,
        "fc1_b": jnp.zeros((hidden,), jnp.float32),
        "fc2_w": jax.random.normal(ks[3], (hidden, out_dim), jnp.float32) * s,
        "fc2_b": jnp.zeros((out_dim,), jnp.float32),
    }


def pack_params(actor, critic, action_dim, hidden=64):
    """Merge actor+critic into single-pass tensors (one-time transform)."""
    A = action_dim
    assert A + 1 <= 128, "action_dim + 1 must fit the 128-lane output slab"

    # conv1: shared input -> concatenate output channels.
    w1 = jnp.concatenate([_conv_w_to_mat(actor["conv1_w"]),
                          _conv_w_to_mat(critic["conv1_w"])], axis=1)      # (48,32)
    b1 = jnp.concatenate([actor["conv1_b"], critic["conv1_b"]])[None, :]   # (1,32)

    # conv2: per-head inputs -> block-diagonal over (cin, cout).
    w2a = _conv_w_to_mat(actor["conv2_w"]).reshape(4, 4, 16, 32)
    w2c = _conv_w_to_mat(critic["conv2_w"]).reshape(4, 4, 16, 32)
    w2 = jnp.zeros((4, 4, 32, 64), jnp.float32)
    w2 = w2.at[:, :, :16, :32].set(w2a).at[:, :, 16:, 32:].set(w2c)
    w2 = w2.reshape(512, 64)
    b2 = jnp.concatenate([actor["conv2_b"], critic["conv2_b"]])[None, :]   # (1,64)

    # fc1: permute rows from torch NCHW-flatten (c*16 + h*4 + w) to the kernel's
    # (patch*32 + c) order, split off the compass row, block-diagonal over heads.
    def perm(w512):
        return w512.reshape(32, 16, hidden).transpose(1, 0, 2).reshape(512, hidden)

    w3 = jnp.zeros((1024, 2 * hidden), jnp.float32)
    w3 = w3.at[:512, :hidden].set(perm(actor["fc1_w"][:512]))
    w3 = w3.at[512:, hidden:].set(perm(critic["fc1_w"][:512]))
    b3 = jnp.concatenate([actor["fc1_b"], critic["fc1_b"]])[None, :]       # (1,128)
    cw3 = jnp.concatenate([actor["fc1_w"][512], critic["fc1_w"][512]])[None, :]

    # fc2: actor logits in lanes [0, A), critic value in lane A, 128-lane padded.
    w4 = jnp.zeros((2 * hidden, 128), jnp.float32)
    w4 = w4.at[:hidden, :A].set(actor["fc2_w"])
    w4 = w4.at[hidden:, A].set(critic["fc2_w"][:, 0])
    b4 = jnp.zeros((1, 128), jnp.float32)
    b4 = b4.at[0, :A].set(actor["fc2_b"]).at[0, A].set(critic["fc2_b"][0])

    return {
        "w1": w1.astype(jnp.bfloat16), "b1": b1,
        "w2": w2.astype(jnp.bfloat16), "b2": b2,
        "w3": w3.astype(jnp.bfloat16), "b3": b3, "cw3": cw3,
        "w4": w4.astype(jnp.bfloat16), "b4": b4,
    }


# ----------------------------------------------------------------------------
# ActorCritic.evaluate(obs, compass, action)
# ----------------------------------------------------------------------------
def actor_critic_evaluate(obs, compass, action, packed, action_dim):
    if obs.ndim < 4:
        obs = obs[None]
    if obs.ndim > 4:
        obs = jnp.squeeze(obs, axis=1)
    B = obs.shape[0]
    compass = jnp.reshape(compass, (B, 1)).astype(jnp.float32)

    # Shared feature extraction for both heads (obs transposed/patchified once).
    x = jnp.transpose(obs, (0, 2, 3, 1)).astype(jnp.bfloat16)          # NHWC
    p1 = _patchify(x, 4)                                               # (B*256, 48)
    h1 = pallas_linear_relu(p1, packed["w1"], packed["b1"])            # (B*256, 32)
    p2 = _patchify(h1.reshape(B, 16, 16, 32), 4)                       # (B*16, 512)
    h2 = pallas_linear_relu(p2, packed["w2"], packed["b2"])            # (B*16, 64)
    h2 = h2.reshape(B, 16, 64)
    feat = jnp.concatenate([h2[:, :, :32].reshape(B, 512),
                            h2[:, :, 32:].reshape(B, 512)], axis=-1)   # (B, 1024)

    # Fused fc1 + fc2 + log-softmax + Categorical log_prob/entropy + value.
    onehot = jax.nn.one_hot(action, 128, dtype=jnp.float32)            # lane-dense
    slab = pallas_actor_critic_tail(
        feat, packed["w3"], packed["b3"], packed["cw3"], compass,
        packed["w4"], packed["b4"], onehot, action_dim)                # (B, 128)

    logp, ent, value = slab[:, 0], slab[:, 1], slab[:, 2]
    # TODO(synk): act()'s Categorical.sample() + Python-side memory appends are
    # host/RNG side effects with no in-kernel equivalent; only `evaluate`
    # semantics are reproduced here.
    return logp, value, ent


# ----------------------------------------------------------------------------
if __name__ == "__main__":
    key = jax.random.PRNGKey(0)
    k_obs, k_comp, k_actor, k_critic = jax.random.split(key, 4)

    B, action_dim = 2, 8
    obs = jax.random.uniform(k_obs, (B, 3, 64, 64), jnp.float32)       # NCHW
    compass = jax.random.uniform(k_comp, (B, 1), jnp.float32) * 2.0 - 1.0
    action = jnp.array([1, 3], dtype=jnp.int32)

    actor_params = init_head_params(k_actor, action_dim)
    critic_params = init_head_params(k_critic, 1)
    packed = pack_params(actor_params, critic_params, action_dim)

    logp, value, entropy = actor_critic_evaluate(
        obs, compass, action, packed, action_dim)
    jax.block_until_ready((logp, value, entropy))

    assert logp.shape == (B,) and value.shape == (B,) and entropy.shape == (B,)
    assert bool(jnp.all(jnp.isfinite(logp)))
    assert bool(jnp.all(jnp.isfinite(value)))
    assert bool(jnp.all(entropy > 0.0))
    print("KERNEL_OK")
</pallas_src>

<mosaic_0001>
module attributes {stable_mosaic.version = 11 : i64} {
  func.func @_linear_relu_kernel(%arg0: i32, %arg1: memref<512x48xbf16, #tpu.memory_space<vmem>>, %arg2: memref<48x32xbf16, #tpu.memory_space<vmem>>, %arg3: memref<1x32xf32, #tpu.memory_space<vmem>>, %arg4: memref<512x32xbf16, #tpu.memory_space<vmem>>) attributes {dimension_semantics = [#tpu.dimension_semantics<parallel>], iteration_bounds = array<i64: 1>, scalar_prefetch = 0 : i64, scratch_operands = 0 : i64, tpu.core_type = #tpu.core_type<tc>, window_params = [{transform_indices = @transform_0, window_bounds = array<i64: 512, 48>}, {pipeline_mode = #tpu.pipeline_mode<synchronous>, transform_indices = @transform_1, window_bounds = array<i64: 48, 32>}, {pipeline_mode = #tpu.pipeline_mode<synchronous>, transform_indices = @transform_2, window_bounds = array<i64: 1, 32>}, {transform_indices = @transform_3, window_bounds = array<i64: 512, 32>}]} {
    %c0 = arith.constant 0 : index
    %c0_0 = arith.constant 0 : index
    %0 = vector.load %arg1[%c0, %c0_0] : memref<512x48xbf16, #tpu.memory_space<vmem>>, vector<512x48xbf16>
    %c0_1 = arith.constant 0 : index
    %c0_2 = arith.constant 0 : index
    %1 = vector.load %arg2[%c0_1, %c0_2] : memref<48x32xbf16, #tpu.memory_space<vmem>>, vector<48x32xbf16>
    %cst = arith.constant dense<0.000000e+00> : vector<512x32xf32>
    %2 = tpu.matmul %0, %1, %cst {dimension_numbers = #tpu.dot_dimension_numbers<[1], [0], [0], [1], [0, 0, 1, 1], [], []>} : vector<512x48xbf16>, vector<48x32xbf16>, vector<512x32xf32> -> vector<512x32xf32>
    %c0_3 = arith.constant 0 : index
    %c0_4 = arith.constant 0 : index
    %3 = vector.load %arg3[%c0_3, %c0_4] : memref<1x32xf32, #tpu.memory_space<vmem>>, vector<1x32xf32>
    %4 = vector.broadcast %3 : vector<1x32xf32> to vector<512x32xf32>
    %5 = arith.addf %2, %4 : vector<512x32xf32>
    %cst_5 = arith.constant 0.000000e+00 : f32
    %6 = vector.broadcast %cst_5 : f32 to vector<512x32xf32>
    %7 = arith.maximumf %5, %6 : vector<512x32xf32>
    %8 = arith.truncf %7 : vector<512x32xf32> to vector<512x32xbf16>
    %c0_6 = arith.constant 0 : index
    %c0_7 = arith.constant 0 : index
    %9 = vector.load %arg4[%c0_6, %c0_7] : memref<512x32xbf16, #tpu.memory_space<vmem>>, vector<512x32xbf16>
    tpu.vector_store %arg4[%c0_6, %c0_7], %8 {strides = array<i32>} : memref<512x32xbf16, #tpu.memory_space<vmem>>, vector<512x32xbf16>,
    return
  }
  func.func @transform_0(%arg0: i32) -> (i32, i32) {
    %c0_i32 = arith.constant 0 : i32
    %c0_i32_0 = arith.constant 0 : i32
    return %arg0, %c0_i32 : i32, i32
  }
  func.func @transform_1(%arg0: i32) -> (i32, i32) {
    %c0_i32 = arith.constant 0 : i32
    %c0_i32_0 = arith.constant 0 : i32
    %c0_i32_1 = arith.constant 0 : i32
    return %c0_i32, %c0_i32_0 : i32, i32
  }
  func.func @transform_2(%arg0: i32) -> (i32, i32) {
    %c0_i32 = arith.constant 0 : i32
    %c0_i32_0 = arith.constant 0 : i32
    %c0_i32_1 = arith.constant 0 : i32
    return %c0_i32, %c0_i32_0 : i32, i32
  }
  func.func @transform_3(%arg0: i32) -> (i32, i32) {
    %c0_i32 = arith.constant 0 : i32
    %c0_i32_0 = arith.constant 0 : i32
    return %arg0, %c0_i32 : i32, i32
  }
}

</mosaic_0001>

<bundles_post_ra>
// kernel: tpu_custom_call.1
= control target key start
LH: loop header
LB: loop body
LE: loop exit
PB: predicated region body
PF: predicated region fallthrough
CT: control target
= control target key end

     0   :  { %vm270_vm0 = vcmask 392192   ;;  %vm976_vm1 = vcmask 257024   ;;  %s1869_s1 = inlined_call_operand.vmem [shape: bf16[48,32], index: 1, kind: input, shape index: {}]   ;;  %s1870_s0 = inlined_call_operand.vmem [shape: bf16[512,48], index: 0, kind: input, shape index: {}]   ;;  %s1871_s2 = inlined_call_operand.vmem [shape: f32[1,32], index: 2, kind: input, shape index: {}]   ;;  %s1872_s3 = inlined_call_operand.vmem [shape: bf16[512,32], index: 3, kind: output, shape index: {}]  }
   0x1   :  { %v1352_v0 = vld [vmem:[%s1869_s1] sm:$0xff]   ;;  %v1353_v1 = vld [vmem:[%s1869_s1 + $0x8] sm:$0xff]   ;;  %v1354_v2 = vld [vmem:[%s1869_s1 + $0x10] sm:$0xff]  }
   0x2   :  { %1276 = vmatprep.subr.bf16.mxu0 %v1352_v0  ;;  %1346 = vmatprep.subr.bf16.mxu1 %v1352_v0  ;;  %v1355_v3 = vld [vmem:[%s1870_s0] sm:$0xff]   ;;  %v1357_v5 = vld [vmem:[%s1870_s0 + $0x8] sm:$0xff]   ;;  %v1359_v7 = vld [vmem:[%s1870_s0 + $0x10] sm:$0xff]  }
   0x3   :  { %1277 = vmatpush3.bf16.msra.mxu0 %v1352_v0  ;;  %1349 = vmatpush3.bf16.msra.mxu1 %v1352_v0  ;;  %v1356_v4 = vld [vmem:[%s1870_s0 + $0x80] sm:$0xff]   ;;  %v1358_v6 = vld [vmem:[%s1870_s0 + $0x88] sm:$0xff]   ;;  %v1360_v8 = vld [vmem:[%s1870_s0 + $0x90] sm:$0xff]  }
   0x4   :  { %1278 = vmatprep.subr.bf16.mxu0 %v1353_v1  ;;  %1347 = vmatprep.subr.bf16.mxu1 %v1353_v1  ;;  %v1361_v9 = vld [vmem:[%s1870_s0 + $0x18] sm:$0xff]   ;;  %v1363_v11 = vld [vmem:[%s1870_s0 + $0x20] sm:$0xff]   ;;  %v1365_v13 = vld [vmem:[%s1870_s0 + $0x28] sm:$0xff]  }
   0x5   :  { %1282 = vmatprep.mubr.msk.bf16.mxu0 %vm270_vm0, %v1355_v3  ;;  %1314 = vmatprep.mubr.msk.bf16.mxu1 %vm270_vm0, %v1356_v4  ;;  %v1362_v10 = vld [vmem:[%s1870_s0 + $0x98] sm:$0xff]   ;;  %v1364_v12 = vld [vmem:[%s1870_s0 + $0xa0] sm:$0xff]   ;;  %v1366_v14 = vld [vmem:[%s1870_s0 + $0xa8] sm:$0xff]  }
   0x6   :  { %v1367_v15 = vld [vmem:[%s1870_s0 + $0x30] sm:$0xff]   ;;  %v1369_v17 = vld [vmem:[%s1870_s0 + $0x38] sm:$0xff]   ;;  %v1371_v19 = vld [vmem:[%s1870_s0 + $0x40] sm:$0xff]  }
   0x7   :  { %1279 = vmatpush3.bf16.msra.mxu0 %v1353_v1  ;;  %1350 = vmatpush3.bf16.msra.mxu1 %v1353_v1  ;;  %v1368_v16 = vld [vmem:[%s1870_s0 + $0xb0] sm:$0xff]   ;;  %v1370_v18 = vld [vmem:[%s1870_s0 + $0xb8] sm:$0xff]   ;;  %v1372_v20 = vld [vmem:[%s1870_s0 + $0xc0] sm:$0xff]  }
   0x8   :  { %1280 = vmatprep.subr.bf16.mxu0 %v1354_v2  ;;  %1348 = vmatprep.subr.bf16.mxu1 %v1354_v2  ;;  %v1373_v21 = vld [vmem:[%s1870_s0 + $0x48] sm:$0xff]   ;;  %v1375_v23 = vld [vmem:[%s1870_s0 + $0x50] sm:$0xff]   ;;  %v1377_v25 = vld [vmem:[%s1870_s0 + $0x58] sm:$0xff]  }
   0x9   :  { %v1374_v22 = vld [vmem:[%s1870_s0 + $0xc8] sm:$0xff]   ;;  %v1376_v24 = vld [vmem:[%s1870_s0 + $0xd0] sm:$0xff]   ;;  %v1378_v26 = vld [vmem:[%s1870_s0 + $0xd8] sm:$0xff]  }
   0xa   :  { %v1379_v27 = vld [vmem:[%s1870_s0 + $0x60] sm:$0xff]   ;;  %v1381_v29 = vld [vmem:[%s1870_s0 + $0x68] sm:$0xff]   ;;  %v1383_v31 = vld [vmem:[%s1870_s0 + $0x70] sm:$0xff]  }
   0xb   :  { %1281 = vmatpush3.bf16.msra.mxu0 %v1354_v2  ;;  %1351 = vmatpush3.bf16.msra.mxu1 %v1354_v2  ;;  %v1380_v28 = vld [vmem:[%s1870_s0 + $0xe0] sm:$0xff]   ;;  %v1382_v30 = vld [vmem:[%s1870_s0 + $0xe8] sm:$0xff]   ;;  %v1384_v32 = vld [vmem:[%s1870_s0 + $0xf0] sm:$0xff]  }
   0xc   :  { %v1385_v33 = vld [vmem:[%s1870_s0 + $0x78] sm:$0xff]   ;;  %v1547_v35 = vld [vmem:[%s1871_s2] ss:$0 sm:$0xff] }
   0xd   :  { %v1386_v34 = vld [vmem:[%s1870_s0 + $0xf8] sm:$0xff]  }
   0xe   :  { %1283 = vmatmul.mubr.msk.bf16.vlgmr.msra.gmra.mrb[0].mxu0 %vm270_vm0, %v1357_v5  ;;  %1315 = vmatmul.mubr.msk.bf16.vlgmr.msra.gmra.mrb[0].mxu1 %vm270_vm0, %v1358_v6 }
   0xf   :  { %1286 = vmatprep.mubr.msk.bf16.mxu0 %vm270_vm0, %v1359_v7  ;;  %1318 = vmatprep.mubr.msk.bf16.mxu1 %vm270_vm0, %v1360_v8 }
  0x16   :  { %1287 = vmatmul.mubr.msk.bf16.gmra.mrb[4].mxu0 %vm270_vm0, %v1361_v9  ;;  %1319 = vmatmul.mubr.msk.bf16.gmra.mrb[4].mxu1 %vm270_vm0, %v1362_v10 }
  0x17   :  { %1290 = vmatprep.mubr.msk.bf16.mxu0 %vm270_vm0, %v1363_v11  ;;  %1322 = vmatprep.mubr.msk.bf16.mxu1 %vm270_vm0, %v1364_v12 }
  0x1e   :  { %1291 = vmatmul.mubr.msk.bf16.gmra.mrb[8].mxu0 %vm270_vm0, %v1365_v13  ;;  %1323 = vmatmul.mubr.msk.bf16.gmra.mrb[8].mxu1 %vm270_vm0, %v1366_v14 }
  0x1f   :  { %1294 = vmatprep.mubr.msk.bf16.mxu0 %vm270_vm0, %v1367_v15  ;;  %1326 = vmatprep.mubr.msk.bf16.mxu1 %vm270_vm0, %v1368_v16 }
  0x26   :  { %1295 = vmatmul.mubr.msk.bf16.gmra.mrb[12].mxu0 %vm270_vm0, %v1369_v17  ;;  %1327 = vmatmul.mubr.msk.bf16.gmra.mrb[12].mxu1 %vm270_vm0, %v1370_v18 }
  0x27   :  { %1298 = vmatprep.mubr.msk.bf16.mxu0 %vm270_vm0, %v1371_v19  ;;  %1330 = vmatprep.mubr.msk.bf16.mxu1 %vm270_vm0, %v1372_v20 }
  0x2e   :  { %1299 = vmatmul.mubr.msk.bf16.gmra.mrb[16].mxu0 %vm270_vm0, %v1373_v21  ;;  %1331 = vmatmul.mubr.msk.bf16.gmra.mrb[16].mxu1 %vm270_vm0, %v1374_v22 }
  0x2f   :  { %1302 = vmatprep.mubr.msk.bf16.mxu0 %vm270_vm0, %v1375_v23  ;;  %1334 = vmatprep.mubr.msk.bf16.mxu1 %vm270_vm0, %v1376_v24 }
  0x36   :  { %1303 = vmatmul.mubr.msk.bf16.gmra.mrb[20].mxu0 %vm270_vm0, %v1377_v25  ;;  %1335 = vmatmul.mubr.msk.bf16.gmra.mrb[20].mxu1 %vm270_vm0, %v1378_v26 }
  0x37   :  { %1306 = vmatprep.mubr.msk.bf16.mxu0 %vm270_vm0, %v1379_v27  ;;  %1338 = vmatprep.mubr.msk.bf16.mxu1 %vm270_vm0, %v1380_v28 }
  0x3e   :  { %1307 = vmatmul.mubr.msk.bf16.gmra.mrb[24].mxu0 %vm270_vm0, %v1381_v29  ;;  %1339 = vmatmul.mubr.msk.bf16.gmra.mrb[24].mxu1 %vm270_vm0, %v1382_v30 }
  0x3f   :  { %1310 = vmatprep.mubr.msk.bf16.mxu0 %vm270_vm0, %v1383_v31  ;;  %1342 = vmatprep.mubr.msk.bf16.mxu1 %vm270_vm0, %v1384_v32 }
  0x46   :  { %1311 = vmatmul.mubr.msk.bf16.gmra.mrb[28].mxu0 %vm270_vm0, %v1385_v33  ;;  %1343 = vmatmul.mubr.msk.bf16.gmra.mrb[28].mxu1 %vm270_vm0, %v1386_v34 }
  0xe1   :  { %v1284_v36 = vpop.f32.mrb[0].mxu0  ;;  %v1316_v37 = vpop.f32.mrb[0].mxu1 }
  0xe2   :  { %v410_v38 = vadd.f32 %v1284_v36, %v1547_v35  ;;  %v538_v39 = vadd.f32 %v1316_v37, %v1547_v35  ;;  %v401_v40 = vpop.f32.mrb[1].mxu0  ;;  %v529_v41 = vpop.f32.mrb[1].mxu1 }
  0xe3   :  { %v402_v42 = vadd.f32 %v1547_v35, %v401_v40  ;;  %v530_v43 = vadd.f32 %v1547_v35, %v529_v41  ;;  %v1285_v44 = vpop.f32.mrb[2].mxu0  ;;  %v1317_v45 = vpop.f32.mrb[2].mxu1 }
  0xe4   :  { %v658_v46 = vmax.f32 %v410_v38, 0.0  ;;  %v690_v47 = vmax.f32 %v538_v39, 0.0  ;;  %v413_v48 = vadd.f32 %v1285_v44, %v1547_v35  ;;  %v541_v49 = vadd.f32 %v1317_v45, %v1547_v35  ;;  %v404_v50 = vpop.f32.mrb[3].mxu0  ;;  %v532_v51 = vpop.f32.mrb[3].mxu1 }
  0xe5   :  { %v656_v52 = vmax.f32 %v402_v42, 0.0  ;;  %v688_v53 = vmax.f32 %v530_v43, 0.0  ;;  %v405_v54 = vadd.f32 %v1547_v35, %v404_v50  ;;  %v533_v55 = vadd.f32 %v1547_v35, %v532_v51 }
  0xe6   :  { %v1179_v56 = vpack.c.bf16 %v658_v46, %v658_v46  ;;  %v1211_v57 = vpack.c.bf16 %v690_v47, %v690_v47  ;;  %v659_v58 = vmax.f32 %v413_v48, 0.0  ;;  %v691_v59 = vmax.f32 %v541_v49, 0.0 }
  0xe7   :  { %v1177_v60 = vpack.c.bf16 %v656_v52, %v656_v52  ;;  %v1209_v61 = vpack.c.bf16 %v688_v53, %v688_v53  ;;  %v657_v62 = vmax.f32 %v405_v54, 0.0  ;;  %v689_v63 = vmax.f32 %v533_v55, 0.0 }
  0xe8   :  { %979 = vst.msk [vmem:[%s1872_s3 + $0x8] sm:$0xf] %vm976_vm1, %v1179_v56  ;;  %1011 = vst.msk [vmem:[%s1872_s3 + $0x88] sm:$0xf] %vm976_vm1, %v1211_v57  ;;  %v1180_v0 = vpack.c.bf16 %v659_v58, %v659_v58  ;;  %v1212_v1 = vpack.c.bf16 %v691_v59, %v691_v59 }
  0xe9   :  { %977 = vst.msk [vmem:[%s1872_s3] sm:$0xf] %vm976_vm1, %v1177_v60  ;;  %1009 = vst.msk [vmem:[%s1872_s3 + $0x80] sm:$0xf] %vm976_vm1, %v1209_v61  ;;  %v1178_v2 = vpack.c.bf16 %v657_v62, %v657_v62  ;;  %v1210_v3 = vpack.c.bf16 %v689_v63, %v689_v63  ;;  %v1288_v4 = vpop.f32.mrb[4].mxu0  ;;  %v1320_v5 = vpop.f32.mrb[4].mxu1 }
  0xea   :  { %980 = vst.msk [vmem:[%s1872_s3 + $0xc] sm:$0xf] %vm976_vm1, %v1180_v0  ;;  %1012 = vst.msk [vmem:[%s1872_s3 + $0x8c] sm:$0xf] %vm976_vm1, %v1212_v1  ;;  %v426_v6 = vadd.f32 %v1288_v4, %v1547_v35  ;;  %v554_v7 = vadd.f32 %v1320_v5, %v1547_v35  ;;  %v417_v8 = vpop.f32.mrb[5].mxu0  ;;  %v545_v9 = vpop.f32.mrb[5].mxu1 }
  0xeb   :  { %978 = vst.msk [vmem:[%s1872_s3 + $0x4] sm:$0xf] %vm976_vm1, %v1178_v2  ;;  %1010 = vst.msk [vmem:[%s1872_s3 + $0x84] sm:$0xf] %vm976_vm1, %v1210_v3  ;;  %v418_v10 = vadd.f32 %v1547_v35, %v417_v8  ;;  %v546_v11 = vadd.f32 %v1547_v35, %v545_v9  ;;  %v1289_v12 = vpop.f32.mrb[6].mxu0  ;;  %v1321_v13 = vpop.f32.mrb[6].mxu1 }
  0xec   :  { %v662_v14 = vmax.f32 %v426_v6, 0.0  ;;  %v694_v15 = vmax.f32 %v554_v7, 0.0  ;;  %v429_v16 = vadd.f32 %v1289_v12, %v1547_v35  ;;  %v557_v17 = vadd.f32 %v1321_v13, %v1547_v35  ;;  %v420_v18 = vpop.f32.mrb[7].mxu0  ;;  %v548_v19 = vpop.f32.mrb[7].mxu1 }
  0xed   :  { %v660_v20 = vmax.f32 %v418_v10, 0.0  ;;  %v692_v21 = vmax.f32 %v546_v11, 0.0  ;;  %v421_v22 = vadd.f32 %v1547_v35, %v420_v18  ;;  %v549_v23 = vadd.f32 %v1547_v35, %v548_v19 }
  0xee   :  { %v1183_v24 = vpack.c.bf16 %v662_v14, %v662_v14  ;;  %v1215_v25 = vpack.c.bf16 %v694_v15, %v694_v15  ;;  %v663_v26 = vmax.f32 %v429_v16, 0.0  ;;  %v695_v27 = vmax.f32 %v557_v17, 0.0 }
  0xef   :  { %v1181_v28 = vpack.c.bf16 %v660_v20, %v660_v20  ;;  %v1213_v29 = vpack.c.bf16 %v692_v21, %v692_v21  ;;  %v661_v30 = vmax.f32 %v421_v22, 0.0  ;;  %v693_v31 = vmax.f32 %v549_v23, 0.0 }
  0xf0   :  { %983 = vst.msk [vmem:[%s1872_s3 + $0x18] sm:$0xf] %vm976_vm1, %v1183_v24  ;;  %1015 = vst.msk [vmem:[%s1872_s3 + $0x98] sm:$0xf] %vm976_vm1, %v1215_v25  ;;  %v1184_v32 = vpack.c.bf16 %v663_v26, %v663_v26  ;;  %v1216_v33 = vpack.c.bf16 %v695_v27, %v695_v27 }
  0xf1   :  { %981 = vst.msk [vmem:[%s1872_s3 + $0x10] sm:$0xf] %vm976_vm1, %v1181_v28  ;;  %1013 = vst.msk [vmem:[%s1872_s3 + $0x90] sm:$0xf] %vm976_vm1, %v1213_v29  ;;  %v1182_v34 = vpack.c.bf16 %v661_v30, %v661_v30  ;;  %v1214_v36 = vpack.c.bf16 %v693_v31, %v693_v31  ;;  %v1292_v37 = vpop.f32.mrb[8].mxu0  ;;  %v1324_v38 = vpop.f32.mrb[8].mxu1 }
  0xf2   :  { %984 = vst.msk [vmem:[%s1872_s3 + $0x1c] sm:$0xf] %vm976_vm1, %v1184_v32  ;;  %1016 = vst.msk [vmem:[%s1872_s3 + $0x9c] sm:$0xf] %vm976_vm1, %v1216_v33  ;;  %v442_v39 = vadd.f32 %v1292_v37, %v1547_v35  ;;  %v570_v40 = vadd.f32 %v1324_v38, %v1547_v35  ;;  %v433_v41 = vpop.f32.mrb[9].mxu0  ;;  %v561_v42 = vpop.f32.mrb[9].mxu1 }
  0xf3   :  { %982 = vst.msk [vmem:[%s1872_s3 + $0x14] sm:$0xf] %vm976_vm1, %v1182_v34  ;;  %1014 = vst.msk [vmem:[%s1872_s3 + $0x94] sm:$0xf] %vm976_vm1, %v1214_v36  ;;  %v434_v43 = vadd.f32 %v1547_v35, %v433_v41  ;;  %v562_v44 = vadd.f32 %v1547_v35, %v561_v42  ;;  %v1293_v45 = vpop.f32.mrb[10].mxu0  ;;  %v1325_v46 = vpop.f32.mrb[10].mxu1 }
  0xf4   :  { %v666_v47 = vmax.f32 %v442_v39, 0.0  ;;  %v698_v48 = vmax.f32 %v570_v40, 0.0  ;;  %v445_v49 = vadd.f32 %v1293_v45, %v1547_v35  ;;  %v573_v50 = vadd.f32 %v1325_v46, %v1547_v35  ;;  %v436_v51 = vpop.f32.mrb[11].mxu0  ;;  %v564_v52 = vpop.f32.mrb[11].mxu1 }
  0xf5   :  { %v664_v53 = vmax.f32 %v434_v43, 0.0  ;;  %v696_v54 = vmax.f32 %v562_v44, 0.0  ;;  %v437_v55 = vadd.f32 %v1547_v35, %v436_v51  ;;  %v565_v56 = vadd.f32 %v1547_v35, %v564_v52 }
  0xf6   :  { %v1187_v57 = vpack.c.bf16 %v666_v47, %v666_v47  ;;  %v1219_v58 = vpack.c.bf16 %v698_v48, %v698_v48  ;;  %v667_v59 = vmax.f32 %v445_v49, 0.0  ;;  %v699_v60 = vmax.f32 %v573_v50, 0.0 }
  0xf7   :  { %v1185_v61 = vpack.c.bf16 %v664_v53, %v664_v53  ;;  %v1217_v62 = vpack.c.bf16 %v696_v54, %v696_v54  ;;  %v665_v63 = vmax.f32 %v437_v55, 0.0  ;;  %v697_v0 = vmax.f32 %v565_v56, 0.0 }
  0xf8   :  { %987 = vst.msk [vmem:[%s1872_s3 + $0x28] sm:$0xf] %vm976_vm1, %v1187_v57  ;;  %1019 = vst.msk [vmem:[%s1872_s3 + $0xa8] sm:$0xf] %vm976_vm1, %v1219_v58  ;;  %v1188_v1 = vpack.c.bf16 %v667_v59, %v667_v59  ;;  %v1220_v2 = vpack.c.bf16 %v699_v60, %v699_v60 }
  0xf9   :  { %985 = vst.msk [vmem:[%s1872_s3 + $0x20] sm:$0xf] %vm976_vm1, %v1185_v61  ;;  %1017 = vst.msk [vmem:[%s1872_s3 + $0xa0] sm:$0xf] %vm976_vm1, %v1217_v62  ;;  %v1186_v3 = vpack.c.bf16 %v665_v63, %v665_v63  ;;  %v1218_v4 = vpack.c.bf16 %v697_v0, %v697_v0  ;;  %v1296_v5 = vpop.f32.mrb[12].mxu0  ;;  %v1328_v6 = vpop.f32.mrb[12].mxu1 }
  0xfa   :  { %988 = vst.msk [vmem:[%s1872_s3 + $0x2c] sm:$0xf] %vm976_vm1, %v1188_v1  ;;  %1020 = vst.msk [vmem:[%s1872_s3 + $0xac] sm:$0xf] %vm976_vm1, %v1220_v2  ;;  %v458_v7 = vadd.f32 %v1296_v5, %v1547_v35  ;;  %v586_v8 = vadd.f32 %v1328_v6, %v1547_v35  ;;  %v449_v9 = vpop.f32.mrb[13].mxu0  ;;  %v577_v10 = vpop.f32.mrb[13].mxu1 }
  0xfb   :  { %986 = vst.msk [vmem:[%s1872_s3 + $0x24] sm:$0xf] %vm976_vm1, %v1186_v3  ;;  %1018 = vst.msk [vmem:[%s1872_s3 + $0xa4] sm:$0xf] %vm976_vm1, %v1218_v4  ;;  %v450_v11 = vadd.f32 %v1547_v35, %v449_v9  ;;  %v578_v12 = vadd.f32 %v1547_v35, %v577_v10  ;;  %v1297_v13 = vpop.f32.mrb[14].mxu0  ;;  %v1329_v14 = vpop.f32.mrb[14].mxu1 }
  0xfc   :  { %v670_v15 = vmax.f32 %v458_v7, 0.0  ;;  %v702_v16 = vmax.f32 %v586_v8, 0.0  ;;  %v461_v17 = vadd.f32 %v1297_v13, %v1547_v35  ;;  %v589_v18 = vadd.f32 %v1329_v14, %v1547_v35  ;;  %v452_v19 = vpop.f32.mrb[15].mxu0  ;;  %v580_v20 = vpop.f32.mrb[15].mxu1 }
  0xfd   :  { %v668_v21 = vmax.f32 %v450_v11, 0.0  ;;  %v700_v22 = vmax.f32 %v578_v12, 0.0  ;;  %v453_v23 = vadd.f32 %v1547_v35, %v452_v19  ;;  %v581_v24 = vadd.f32 %v1547_v35, %v580_v20 }
  0xfe   :  { %v1191_v25 = vpack.c.bf16 %v670_v15, %v670_v15  ;;  %v1223_v26 = vpack.c.bf16 %v702_v16, %v702_v16  ;;  %v671_v27 = vmax.f32 %v461_v17, 0.0  ;;  %v703_v28 = vmax.f32 %v589_v18, 0.0 }
  0xff   :  { %v1189_v29 = vpack.c.bf16 %v668_v21, %v668_v21  ;;  %v1221_v30 = vpack.c.bf16 %v700_v22, %v700_v22  ;;  %v669_v31 = vmax.f32 %v453_v23, 0.0  ;;  %v701_v32 = vmax.f32 %v581_v24, 0.0 }
 0x100   :  { %991 = vst.msk [vmem:[%s1872_s3 + $0x38] sm:$0xf] %vm976_vm1, %v1191_v25  ;;  %1023 = vst.msk [vmem:[%s1872_s3 + $0xb8] sm:$0xf] %vm976_vm1, %v1223_v26  ;;  %v1192_v33 = vpack.c.bf16 %v671_v27, %v671_v27  ;;  %v1224_v34 = vpack.c.bf16 %v703_v28, %v703_v28 }
 0x101   :  { %989 = vst.msk [vmem:[%s1872_s3 + $0x30] sm:$0xf] %vm976_vm1, %v1189_v29  ;;  %1021 = vst.msk [vmem:[%s1872_s3 + $0xb0] sm:$0xf] %vm976_vm1, %v1221_v30  ;;  %v1190_v36 = vpack.c.bf16 %v669_v31, %v669_v31  ;;  %v1222_v37 = vpack.c.bf16 %v701_v32, %v701_v32  ;;  %v1300_v38 = vpop.f32.mrb[16].mxu0  ;;  %v1332_v39 = vpop.f32.mrb[16].mxu1 }
 0x102   :  { %992 = vst.msk [vmem:[%s1872_s3 + $0x3c] sm:$0xf] %vm976_vm1, %v1192_v33  ;;  %1024 = vst.msk [vmem:[%s1872_s3 + $0xbc] sm:$0xf] %vm976_vm1, %v1224_v34  ;;  %v474_v40 = vadd.f32 %v1300_v38, %v1547_v35  ;;  %v602_v41 = vadd.f32 %v1332_v39, %v1547_v35  ;;  %v465_v42 = vpop.f32.mrb[17].mxu0  ;;  %v593_v43 = vpop.f32.mrb[17].mxu1 }
 0x103   :  { %990 = vst.msk [vmem:[%s1872_s3 + $0x34] sm:$0xf] %vm976_vm1, %v1190_v36  ;;  %1022 = vst.msk [vmem:[%s1872_s3 + $0xb4] sm:$0xf] %vm976_vm1, %v1222_v37  ;;  %v466_v44 = vadd.f32 %v1547_v35, %v465_v42  ;;  %v594_v45 = vadd.f32 %v1547_v35, %v593_v43  ;;  %v1301_v46 = vpop.f32.mrb[18].mxu0  ;;  %v1333_v47 = vpop.f32.mrb[18].mxu1 }
 0x104   :  { %v674_v48 = vmax.f32 %v474_v40, 0.0  ;;  %v706_v49 = vmax.f32 %v602_v41, 0.0  ;;  %v477_v50 = vadd.f32 %v1301_v46, %v1547_v35  ;;  %v605_v51 = vadd.f32 %v1333_v47, %v1547_v35  ;;  %v468_v52 = vpop.f32.mrb[19].mxu0  ;;  %v596_v53 = vpop.f32.mrb[19].mxu1 }
 0x105   :  { %v672_v54 = vmax.f32 %v466_v44, 0.0  ;;  %v704_v55 = vmax.f32 %v594_v45, 0.0  ;;  %v469_v56 = vadd.f32 %v1547_v35, %v468_v52  ;;  %v597_v57 = vadd.f32 %v1547_v35, %v596_v53 }
 0x106   :  { %v1195_v58 = vpack.c.bf16 %v674_v48, %v674_v48  ;;  %v1227_v59 = vpack.c.bf16 %v706_v49, %v706_v49  ;;  %v675_v60 = vmax.f32 %v477_v50, 0.0  ;;  %v707_v61 = vmax.f32 %v605_v51, 0.0 }
 0x107   :  { %v1193_v62 = vpack.c.bf16 %v672_v54, %v672_v54  ;;  %v1225_v63 = vpack.c.bf16 %v704_v55, %v704_v55  ;;  %v673_v0 = vmax.f32 %v469_v56, 0.0  ;;  %v705_v1 = vmax.f32 %v597_v57, 0.0 }
 0x108   :  { %995 = vst.msk [vmem:[%s1872_s3 + $0x48] sm:$0xf] %vm976_vm1, %v1195_v58  ;;  %1027 = vst.msk [vmem:[%s1872_s3 + $0xc8] sm:$0xf] %vm976_vm1, %v1227_v59  ;;  %v1196_v2 = vpack.c.bf16 %v675_v60, %v675_v60  ;;  %v1228_v3 = vpack.c.bf16 %v707_v61, %v707_v61 }
 0x109   :  { %993 = vst.msk [vmem:[%s1872_s3 + $0x40] sm:$0xf] %vm976_vm1, %v1193_v62  ;;  %1025 = vst.msk [vmem:[%s1872_s3 + $0xc0] sm:$0xf] %vm976_vm1, %v1225_v63  ;;  %v1194_v4 = vpack.c.bf16 %v673_v0, %v673_v0  ;;  %v1226_v5 = vpack.c.bf16 %v705_v1, %v705_v1  ;;  %v1304_v6 = vpop.f32.mrb[20].mxu0  ;;  %v1336_v7 = vpop.f32.mrb[20].mxu1 }
 0x10a   :  { %996 = vst.msk [vmem:[%s1872_s3 + $0x4c] sm:$0xf] %vm976_vm1, %v1196_v2  ;;  %1028 = vst.msk [vmem:[%s1872_s3 + $0xcc] sm:$0xf] %vm976_vm1, %v1228_v3  ;;  %v490_v8 = vadd.f32 %v1304_v6, %v1547_v35  ;;  %v618_v9 = vadd.f32 %v1336_v7, %v1547_v35  ;;  %v481_v10 = vpop.f32.mrb[21].mxu0  ;;  %v609_v11 = vpop.f32.mrb[21].mxu1 }
 0x10b   :  { %994 = vst.msk [vmem:[%s1872_s3 + $0x44] sm:$0xf] %vm976_vm1, %v1194_v4  ;;  %1026 = vst.msk [vmem:[%s1872_s3 + $0xc4] sm:$0xf] %vm976_vm1, %v1226_v5  ;;  %v482_v12 = vadd.f32 %v1547_v35, %v481_v10  ;;  %v610_v13 = vadd.f32 %v1547_v35, %v609_v11  ;;  %v1305_v14 = vpop.f32.mrb[22].mxu0  ;;  %v1337_v15 = vpop.f32.mrb[22].mxu1 }
 0x10c   :  { %v678_v16 = vmax.f32 %v490_v8, 0.0  ;;  %v710_v17 = vmax.f32 %v618_v9, 0.0  ;;  %v493_v18 = vadd.f32 %v1305_v14, %v1547_v35  ;;  %v621_v19 = vadd.f32 %v1337_v15, %v1547_v35  ;;  %v484_v20 = vpop.f32.mrb[23].mxu0  ;;  %v612_v21 = vpop.f32.mrb[23].mxu1 }
 0x10d   :  { %v676_v22 = vmax.f32 %v482_v12, 0.0  ;;  %v708_v23 = vmax.f32 %v610_v13, 0.0  ;;  %v485_v24 = vadd.f32 %v1547_v35, %v484_v20  ;;  %v613_v25 = vadd.f32 %v1547_v35, %v612_v21 }
 0x10e   :  { %v1199_v26 = vpack.c.bf16 %v678_v16, %v678_v16  ;;  %v1231_v27 = vpack.c.bf16 %v710_v17, %v710_v17  ;;  %v679_v28 = vmax.f32 %v493_v18, 0.0  ;;  %v711_v29 = vmax.f32 %v621_v19, 0.0 }
 0x10f   :  { %v1197_v30 = vpack.c.bf16 %v676_v22, %v676_v22  ;;  %v1229_v31 = vpack.c.bf16 %v708_v23, %v708_v23  ;;  %v677_v32 = vmax.f32 %v485_v24, 0.0  ;;  %v709_v33 = vmax.f32 %v613_v25, 0.0 }
 0x110   :  { %999 = vst.msk [vmem:[%s1872_s3 + $0x58] sm:$0xf] %vm976_vm1, %v1199_v26  ;;  %1031 = vst.msk [vmem:[%s1872_s3 + $0xd8] sm:$0xf] %vm976_vm1, %v1231_v27  ;;  %v1200_v34 = vpack.c.bf16 %v679_v28, %v679_v28  ;;  %v1232_v36 = vpack.c.bf16 %v711_v29, %v711_v29 }
 0x111   :  { %997 = vst.msk [vmem:[%s1872_s3 + $0x50] sm:$0xf] %vm976_vm1, %v1197_v30  ;;  %1029 = vst.msk [vmem:[%s1872_s3 + $0xd0] sm:$0xf] %vm976_vm1, %v1229_v31  ;;  %v1198_v37 = vpack.c.bf16 %v677_v32, %v677_v32  ;;  %v1230_v38 = vpack.c.bf16 %v709_v33, %v709_v33  ;;  %v1308_v39 = vpop.f32.mrb[24].mxu0  ;;  %v1340_v40 = vpop.f32.mrb[24].mxu1 }
 0x112   :  { %1000 = vst.msk [vmem:[%s1872_s3 + $0x5c] sm:$0xf] %vm976_vm1, %v1200_v34  ;;  %1032 = vst.msk [vmem:[%s1872_s3 + $0xdc] sm:$0xf] %vm976_vm1, %v1232_v36  ;;  %v506_v41 = vadd.f32 %v1308_v39, %v1547_v35  ;;  %v634_v42 = vadd.f32 %v1340_v40, %v1547_v35  ;;  %v497_v43 = vpop.f32.mrb[25].mxu0  ;;  %v625_v44 = vpop.f32.mrb[25].mxu1 }
 0x113   :  { %998 = vst.msk [vmem:[%s1872_s3 + $0x54] sm:$0xf] %vm976_vm1, %v1198_v37  ;;  %1030 = vst.msk [vmem:[%s1872_s3 + $0xd4] sm:$0xf] %vm976_vm1, %v1230_v38  ;;  %v498_v45 = vadd.f32 %v1547_v35, %v497_v43  ;;  %v626_v46 = vadd.f32 %v1547_v35, %v625_v44  ;;  %v1309_v47 = vpop.f32.mrb[26].mxu0  ;;  %v1341_v48 = vpop.f32.mrb[26].mxu1 }
 0x114   :  { %v682_v49 = vmax.f32 %v506_v41, 0.0  ;;  %v714_v50 = vmax.f32 %v634_v42, 0.0  ;;  %v509_v51 = vadd.f32 %v1309_v47, %v1547_v35  ;;  %v637_v52 = vadd.f32 %v1341_v48, %v1547_v35  ;;  %v500_v53 = vpop.f32.mrb[27].mxu0  ;;  %v628_v54 = vpop.f32.mrb[27].mxu1 }
 0x115   :  { %v680_v55 = vmax.f32 %v498_v45, 0.0  ;;  %v712_v56 = vmax.f32 %v626_v46, 0.0  ;;  %v501_v57 = vadd.f32 %v1547_v35, %v500_v53  ;;  %v629_v58 = vadd.f32 %v1547_v35, %v628_v54 }
 0x116   :  { %v1203_v59 = vpack.c.bf16 %v682_v49, %v682_v49  ;;  %v1235_v60 = vpack.c.bf16 %v714_v50, %v714_v50  ;;  %v683_v61 = vmax.f32 %v509_v51, 0.0  ;;  %v715_v62 = vmax.f32 %v637_v52, 0.0 }
 0x117   :  { %v1201_v63 = vpack.c.bf16 %v680_v55, %v680_v55  ;;  %v1233_v0 = vpack.c.bf16 %v712_v56, %v712_v56  ;;  %v681_v1 = vmax.f32 %v501_v57, 0.0  ;;  %v713_v2 = vmax.f32 %v629_v58, 0.0 }
 0x118   :  { %1003 = vst.msk [vmem:[%s1872_s3 + $0x68] sm:$0xf] %vm976_vm1, %v1203_v59  ;;  %1035 = vst.msk [vmem:[%s1872_s3 + $0xe8] sm:$0xf] %vm976_vm1, %v1235_v60  ;;  %v1204_v3 = vpack.c.bf16 %v683_v61, %v683_v61  ;;  %v1236_v4 = vpack.c.bf16 %v715_v62, %v715_v62 }
 0x119   :  { %1001 = vst.msk [vmem:[%s1872_s3 + $0x60] sm:$0xf] %vm976_vm1, %v1201_v63  ;;  %1033 = vst.msk [vmem:[%s1872_s3 + $0xe0] sm:$0xf] %vm976_vm1, %v1233_v0  ;;  %v1202_v5 = vpack.c.bf16 %v681_v1, %v681_v1  ;;  %v1234_v6 = vpack.c.bf16 %v713_v2, %v713_v2  ;;  %v1312_v7 = vpop.f32.mrb[28].mxu0  ;;  %v1344_v8 = vpop.f32.mrb[28].mxu1 }
 0x11a   :  { %1004 = vst.msk [vmem:[%s1872_s3 + $0x6c] sm:$0xf] %vm976_vm1, %v1204_v3  ;;  %1036 = vst.msk [vmem:[%s1872_s3 + $0xec] sm:$0xf] %vm976_vm1, %v1236_v4  ;;  %v522_v9 = vadd.f32 %v1312_v7, %v1547_v35  ;;  %v650_v10 = vadd.f32 %v1344_v8, %v1547_v35  ;;  %v513_v11 = vpop.f32.mrb[29].mxu0  ;;  %v641_v12 = vpop.f32.mrb[29].mxu1 }
 0x11b   :  { %1002 = vst.msk [vmem:[%s1872_s3 + $0x64] sm:$0xf] %vm976_vm1, %v1202_v5  ;;  %1034 = vst.msk [vmem:[%s1872_s3 + $0xe4] sm:$0xf] %vm976_vm1, %v1234_v6  ;;  %v514_v13 = vadd.f32 %v1547_v35, %v513_v11  ;;  %v642_v14 = vadd.f32 %v1547_v35, %v641_v12  ;;  %v1313_v15 = vpop.f32.mrb[30].mxu0  ;;  %v1345_v16 = vpop.f32.mrb[30].mxu1 }
 0x11c   :  { %v686_v17 = vmax.f32 %v522_v9, 0.0  ;;  %v718_v18 = vmax.f32 %v650_v10, 0.0  ;;  %v525_v19 = vadd.f32 %v1313_v15, %v1547_v35  ;;  %v653_v20 = vadd.f32 %v1345_v16, %v1547_v35  ;;  %v516_v21 = vpop.f32.mrb[31].mxu0  ;;  %v644_v22 = vpop.f32.mrb[31].mxu1 }
 0x11d   :  { %v684_v23 = vmax.f32 %v514_v13, 0.0  ;;  %v716_v24 = vmax.f32 %v642_v14, 0.0  ;;  %v517_v25 = vadd.f32 %v1547_v35, %v516_v21  ;;  %v645_v26 = vadd.f32 %v1547_v35, %v644_v22 }
 0x11e   :  { %v1207_v27 = vpack.c.bf16 %v686_v17, %v686_v17  ;;  %v1239_v28 = vpack.c.bf16 %v718_v18, %v718_v18  ;;  %v687_v29 = vmax.f32 %v525_v19, 0.0  ;;  %v719_v30 = vmax.f32 %v653_v20, 0.0 }
 0x11f   :  { %v1205_v31 = vpack.c.bf16 %v684_v23, %v684_v23  ;;  %v1237_v32 = vpack.c.bf16 %v716_v24, %v716_v24  ;;  %v685_v33 = vmax.f32 %v517_v25, 0.0  ;;  %v717_v34 = vmax.f32 %v645_v26, 0.0 }
 0x120   :  { %1007 = vst.msk [vmem:[%s1872_s3 + $0x78] sm:$0xf] %vm976_vm1, %v1207_v27  ;;  %1039 = vst.msk [vmem:[%s1872_s3 + $0xf8] sm:$0xf] %vm976_vm1, %v1239_v28  ;;  %v1208_v36 = vpack.c.bf16 %v687_v29, %v687_v29  ;;  %v1240_v35 = vpack.c.bf16 %v719_v30, %v719_v30 }
 0x121   :  { %1005 = vst.msk [vmem:[%s1872_s3 + $0x70] sm:$0xf] %vm976_vm1, %v1205_v31  ;;  %1037 = vst.msk [vmem:[%s1872_s3 + $0xf0] sm:$0xf] %vm976_vm1, %v1237_v32  ;;  %v1206_v37 = vpack.c.bf16 %v685_v33, %v685_v33  ;;  %v1238_v38 = vpack.c.bf16 %v717_v34, %v717_v34 }
 0x122   :  { %1008 = vst.msk [vmem:[%s1872_s3 + $0x7c] sm:$0xf] %vm976_vm1, %v1208_v36  ;;  %1040 = vst.msk [vmem:[%s1872_s3 + $0xfc] sm:$0xf] %vm976_vm1, %v1240_v35 }
 0x123   :  { %1006 = vst.msk [vmem:[%s1872_s3 + $0x74] sm:$0xf] %vm976_vm1, %v1206_v37  ;;  %1038 = vst.msk [vmem:[%s1872_s3 + $0xf4] sm:$0xf] %vm976_vm1, %v1238_v38 }

</bundles_post_ra>
